<compile_context>
chip_gen: v7x
topology: tpu7x:2x2x1
jax: 0.10.0
libtpu: 0.0.40
codegen_flags: <defaults>
</compile_context>

<pallas_src>
import functools

import jax
import jax.numpy as jnp
from jax.experimental import pallas as pl
from jax.experimental.pallas import tpu as pltpu


def _round_up(x: int, m: int) -> int:
    return ((x + m - 1) // m) * m


def _cdiv(a: int, b: int) -> int:
    return -(-a // b)


def _vmem_capacity_bytes() -> int:
    try:
        return int(pltpu.get_tpu_info().vmem_capacity_bytes)
    except Exception:
        return 64 << 20  # conservative fallback (v7x-sized)


def _kldiv_kernel(logits_ref, targets_ref, partial_ref,
                  m_x_ref, m_t_ref, s_x_ref, s_t_ref, a_ref,
                  *, inv_T, n_rows, n_cols, mask_rows, mask_cols):
    """Grid point (i, j): row tile i, class chunk j (online logsumexp over j)."""
    i = pl.program_id(0)
    j = pl.program_id(1)
    nj = pl.num_programs(1)
    tn, tc = logits_ref.shape

    @pl.when(j == 0)
    def _init():
        m_x_ref[...] = jnp.full(m_x_ref.shape, -jnp.inf, jnp.float32)
        m_t_ref[...] = jnp.full(m_t_ref.shape, -jnp.inf, jnp.float32)
        s_x_ref[...] = jnp.zeros(s_x_ref.shape, jnp.float32)
        s_t_ref[...] = jnp.zeros(s_t_ref.shape, jnp.float32)
        a_ref[...] = jnp.zeros(a_ref.shape, jnp.float32)

    # All math in f32 regardless of HBM dtype (bf16 ingestion halves traffic).
    # TODO(synk): on v7x a bf16 exp(t) path would dodge a possible EUP ceiling
    # for bf16 callers; kept f32 here for accuracy across all generations.
    x = logits_ref[...].astype(jnp.float32) * inv_T          # (tn, tc)
    t = targets_ref[...].astype(jnp.float32) * inv_T          # (tn, tc)

    if mask_cols:
        col_ids = jax.lax.broadcasted_iota(jnp.int32, (tn, tc), 1)
        col_ok = col_ids < (n_cols - j * tc)
        neg = jnp.float32(-1e30)
        x = jnp.where(col_ok, x, neg)
        t = jnp.where(col_ok, t, neg)

    m_x_old = m_x_ref[...]
    m_t_old = m_t_ref[...]
    m_x_new = jnp.maximum(m_x_old, jnp.max(x, axis=-1, keepdims=True))
    m_t_new = jnp.maximum(m_t_old, jnp.max(t, axis=-1, keepdims=True))
    r_x = jnp.exp(m_x_old - m_x_new)   # == 0 on the first chunk (exp(-inf))
    r_t = jnp.exp(m_t_old - m_t_new)

    e_x = jnp.exp(x - m_x_new)                                 # (tn, tc)
    e_t = jnp.exp(t - m_t_new)                                 # (tn, tc)

    s_x_ref[...] = s_x_ref[...] * r_x + jnp.sum(e_x, axis=-1, keepdims=True)
    s_t_ref[...] = s_t_ref[...] * r_t + jnp.sum(e_t, axis=-1, keepdims=True)
    a_ref[...] = a_ref[...] * r_t + jnp.sum(e_t * (t - x), axis=-1, keepdims=True)
    m_x_ref[...] = m_x_new
    m_t_ref[...] = m_t_new

    @pl.when(j == nj - 1)
    def _finalize():
        s_x = s_x_ref[...]
        s_t = s_t_ref[...]
        # kl_row = A / s_t + (m_x + log s_x) - (m_t + log s_t)   (sum_c p == 1)
        kl = (a_ref[...] / s_t
              + (m_x_ref[...] + jnp.log(s_x))
              - (m_t_ref[...] + jnp.log(s_t)))                  # (tn, 1)
        if mask_rows:
            row_ids = jax.lax.broadcasted_iota(jnp.int32, (tn, 1), 0)
            kl = jnp.where(row_ids < (n_rows - i * tn), kl, 0.0)
        tile_sum = jnp.sum(kl, axis=0, keepdims=True)           # (1, 1) f32
        # Lane-dense, unmasked (8,128) store of the partial sum.
        partial_ref[...] = jnp.broadcast_to(tile_sum, partial_ref.shape)


def _choose_tiles(N, C, align, it_l, it_t, vmem_cap):
    """Pick (TN, TC) from the VMEM capacity and an 8 MiB/input-tile DMA target."""
    max_it = max(it_l, it_t)
    usable = min(vmem_cap * 3 // 4, 96 << 20)   # leave Mosaic scratch headroom
    target_in_tile = 8 << 20                    # per-input-tile byte target
    # Per-row tile footprint: 2x double-buffered inputs + ~3 live f32 temps.
    bytes_per_row = 2 * C * (it_l + it_t) + 3 * C * 4
    rows_fit = usable // bytes_per_row
    rows_fit = min(rows_fit, target_in_tile // max(1, C * max_it))

    min_rows = min(N, align)
    if rows_fit >= min_rows:
        # Full-width row tiles (no class chunking).
        tc = C
        if N <= align:
            tn = N                                   # full dim -> always legal
        else:
            tn = max(align, (rows_fit // align) * align)
            tn = min(tn, _round_up(N, align))
            # Keep >= 2 row tiles so both v7x TensorCores get work.
            tn = min(tn, _round_up(_cdiv(N, 2), align))
        return tn, tc

    # Class dim too wide for even a minimal row tile: chunk C (online logsumexp).
    tn = min_rows
    bytes_per_col = tn * (2 * (it_l + it_t) + 3 * 4)
    cols_fit = usable // max(1, bytes_per_col)
    cols_fit = min(cols_fit, target_in_tile // max(1, tn * max_it))
    tc = max(128, (cols_fit // 128) * 128)
    tc = min(tc, _round_up(C, 128))
    return tn, tc


def kldiv_pallas(logits, targets, T: float = 1.0, reduction: str = "batchmean",
                 tile_rows=None, tile_cols=None):
    """Pallas equivalent of kldiv(logits, targets, T, reduction='batchmean')."""
    assert reduction == "batchmean", "only 'batchmean' is implemented"
    assert logits.ndim == 2 and logits.shape == targets.shape
    N, C = logits.shape
    it_l = jnp.dtype(logits.dtype).itemsize
    it_t = jnp.dtype(targets.dtype).itemsize
    # Sublane alignment from the *narrowest* input dtype (bf16 packs 16 rows).
    align = max(8, 32 // max(1, min(it_l, it_t)))

    vmem_cap = _vmem_capacity_bytes()
    tn, tc = _choose_tiles(N, C, align, it_l, it_t, vmem_cap)
    if tile_rows is not None:
        tn = tile_rows
    if tile_cols is not None:
        tc = tile_cols
    tn = min(tn, N)
    tc = min(tc, C)

    num_row_tiles = _cdiv(N, tn)
    num_col_tiles = _cdiv(C, tc)
    mask_rows = (N % tn) != 0
    mask_cols = (C % tc) != 0

    # VMEM request: double-buffered input tiles + ~3 live full-tile f32 temps,
    # capped below physical VMEM (<= 56 MiB on v7x) for Mosaic headroom.
    need = 2 * tn * tc * (it_l + it_t) + 3 * tn * tc * 4 + (2 << 20)
    cap = max(16 << 20, min(vmem_cap - (8 << 20), vmem_cap * 7 // 8))
    vmem_limit = int(min(cap, max(8 << 20, need)))

    kernel = functools.partial(
        _kldiv_kernel, inv_T=1.0 / float(T), n_rows=N, n_cols=C,
        mask_rows=mask_rows, mask_cols=mask_cols)

    cost = pl.CostEstimate(
        flops=10 * N * C,
        transcendentals=2 * N * C,
        bytes_accessed=N * C * (it_l + it_t) + num_row_tiles * 8 * 128 * 4)

    partials = pl.pallas_call(
        kernel,
        out_shape=jax.ShapeDtypeStruct((num_row_tiles, 8, 128), jnp.float32),
        grid=(num_row_tiles, num_col_tiles),
        in_specs=[
            pl.BlockSpec((tn, tc), lambda i, j: (i, j)),
            pl.BlockSpec((tn, tc), lambda i, j: (i, j)),
        ],
        out_specs=pl.BlockSpec((1, 8, 128), lambda i, j: (i, 0, 0)),
        scratch_shapes=[pltpu.VMEM((tn, 1), jnp.float32) for _ in range(5)],
        compiler_params=pltpu.CompilerParams(
            dimension_semantics=("parallel", "arbitrary"),
            vmem_limit_bytes=vmem_limit),
        cost_estimate=cost,
    )(logits, targets)

    total = jnp.sum(partials[:, 0, 0])
    # batchmean + T^2 scaling in f32; return f32 (loss kept in full precision).
    return total * (float(T) * float(T) / float(N))


def kldiv_ref(logits, targets, T: float = 1.0):
    """Pure-JAX reference for correctness check."""
    lg = logits.astype(jnp.float32)
    tg = targets.astype(jnp.float32)
    q = jax.nn.log_softmax(lg / T, axis=1)
    p = jax.nn.softmax(tg / T, axis=1)
    log_p = jax.nn.log_softmax(tg / T, axis=1)
    return jnp.sum(p * (log_p - q)) / lg.shape[0] * (T * T)


if __name__ == "__main__":
    key = jax.random.PRNGKey(0)
    k1, k2, k3, k4 = jax.random.split(key, 4)

    # Case 1: small shapes consistent with the module (batch=8, 32 classes).
    N, C, T = 8, 32, 2.0
    logits = jax.random.normal(k1, (N, C), dtype=jnp.float32)
    targets = jax.random.normal(k2, (N, C), dtype=jnp.float32)
    out = jax.block_until_ready(kldiv_pallas(logits, targets, T=T))
    ref = kldiv_ref(logits, targets, T=T)
    assert jnp.allclose(out, ref, rtol=1e-3, atol=1e-5), (out, ref)

    # Case 2: ragged row AND class tiles + the online-logsumexp C-chunk path.
    N2, C2 = 20, 160
    lg2 = jax.random.normal(k3, (N2, C2), dtype=jnp.float32)
    tg2 = jax.random.normal(k4, (N2, C2), dtype=jnp.float32)
    out2 = jax.block_until_ready(
        kldiv_pallas(lg2, tg2, T=1.0, tile_rows=8, tile_cols=128))
    ref2 = kldiv_ref(lg2, tg2, T=1.0)
    assert jnp.allclose(out2, ref2, rtol=1e-3, atol=1e-5), (out2, ref2)

    # Case 3: bf16 HBM ingestion (auto tiles, 16-row alignment, ragged rows).
    lg3 = lg2.astype(jnp.bfloat16)
    tg3 = tg2.astype(jnp.bfloat16)
    out3 = jax.block_until_ready(kldiv_pallas(lg3, tg3, T=2.0))
    ref3 = kldiv_ref(lg3, tg3, T=2.0)
    assert jnp.allclose(out3, ref3, rtol=2e-2, atol=1e-3), (out3, ref3)

    print("KERNEL_OK")
</pallas_src>

<mosaic_0001>
module attributes {stable_mosaic.version = 11 : i64} {
  func.func @_kldiv_kernel(%arg0: i32, %arg1: i32, %arg2: memref<8x32xf32, #tpu.memory_space<vmem>>, %arg3: memref<8x32xf32, #tpu.memory_space<vmem>>, %arg4: memref<1x8x128xf32, #tpu.memory_space<vmem>>, %arg5: memref<8x1xf32, #tpu.memory_space<vmem>>, %arg6: memref<8x1xf32, #tpu.memory_space<vmem>>, %arg7: memref<8x1xf32, #tpu.memory_space<vmem>>, %arg8: memref<8x1xf32, #tpu.memory_space<vmem>>, %arg9: memref<8x1xf32, #tpu.memory_space<vmem>>) attributes {dimension_semantics = [#tpu.dimension_semantics<parallel>, #tpu.dimension_semantics<arbitrary>], iteration_bounds = array<i64: 1, 1>, scalar_prefetch = 0 : i64, scratch_operands = 5 : i64, tpu.core_type = #tpu.core_type<tc>, window_params = [{transform_indices = @transform_0, window_bounds = array<i64: 8, 32>}, {transform_indices = @transform_1, window_bounds = array<i64: 8, 32>}, {transform_indices = @transform_2, window_bounds = array<i64: 1, 8, 128>}]} {
    %c0_i32 = arith.constant 0 : i32
    %0 = arith.cmpi eq, %arg1, %c0_i32 : i32
    %1 = arith.extui %0 : i1 to i32
    %c0_i32_0 = arith.constant 0 : i32
    %2 = arith.cmpi ne, %1, %c0_i32_0 : i32
    scf.if %2 {
      %cst_32 = arith.constant 0xFF800000 : f32
      %52 = vector.broadcast %cst_32 : f32 to vector<8x1xf32>
      %c0_33 = arith.constant 0 : index
      %c0_34 = arith.constant 0 : index
      %53 = vector.load %arg5[%c0_33, %c0_34] : memref<8x1xf32, #tpu.memory_space<vmem>>, vector<8x1xf32>
      tpu.vector_store %arg5[%c0_33, %c0_34], %52 {strides = array<i32>} : memref<8x1xf32, #tpu.memory_space<vmem>>, vector<8x1xf32>,
      %cst_35 = arith.constant 0xFF800000 : f32
      %54 = vector.broadcast %cst_35 : f32 to vector<8x1xf32>
      %c0_36 = arith.constant 0 : index
      %c0_37 = arith.constant 0 : index
      %55 = vector.load %arg6[%c0_36, %c0_37] : memref<8x1xf32, #tpu.memory_space<vmem>>, vector<8x1xf32>
      tpu.vector_store %arg6[%c0_36, %c0_37], %54 {strides = array<i32>} : memref<8x1xf32, #tpu.memory_space<vmem>>, vector<8x1xf32>,
      %cst_38 = arith.constant 0.000000e+00 : f32
      %56 = vector.broadcast %cst_38 : f32 to vector<8x1xf32>
      %c0_39 = arith.constant 0 : index
      %c0_40 = arith.constant 0 : index
      %57 = vector.load %arg7[%c0_39, %c0_40] : memref<8x1xf32, #tpu.memory_space<vmem>>, vector<8x1xf32>
      tpu.vector_store %arg7[%c0_39, %c0_40], %56 {strides = array<i32>} : memref<8x1xf32, #tpu.memory_space<vmem>>, vector<8x1xf32>,
      %cst_41 = arith.constant 0.000000e+00 : f32
      %58 = vector.broadcast %cst_41 : f32 to vector<8x1xf32>
      %c0_42 = arith.constant 0 : index
      %c0_43 = arith.constant 0 : index
      %59 = vector.load %arg8[%c0_42, %c0_43] : memref<8x1xf32, #tpu.memory_space<vmem>>, vector<8x1xf32>
      tpu.vector_store %arg8[%c0_42, %c0_43], %58 {strides = array<i32>} : memref<8x1xf32, #tpu.memory_space<vmem>>, vector<8x1xf32>,
      %cst_44 = arith.constant 0.000000e+00 : f32
      %60 = vector.broadcast %cst_44 : f32 to vector<8x1xf32>
      %c0_45 = arith.constant 0 : index
      %c0_46 = arith.constant 0 : index
      %61 = vector.load %arg9[%c0_45, %c0_46] : memref<8x1xf32, #tpu.memory_space<vmem>>, vector<8x1xf32>
      tpu.vector_store %arg9[%c0_45, %c0_46], %60 {strides = array<i32>} : memref<8x1xf32, #tpu.memory_space<vmem>>, vector<8x1xf32>,
    } else {
    }
    %c0 = arith.constant 0 : index
    %c0_1 = arith.constant 0 : index
    %3 = vector.load %arg2[%c0, %c0_1] : memref<8x32xf32, #tpu.memory_space<vmem>>, vector<8x32xf32>
    %cst = arith.constant 5.000000e-01 : f32
    %4 = vector.broadcast %cst : f32 to vector<8x32xf32>
    %5 = arith.mulf %3, %4 : vector<8x32xf32>
    %c0_2 = arith.constant 0 : index
    %c0_3 = arith.constant 0 : index
    %6 = vector.load %arg3[%c0_2, %c0_3] : memref<8x32xf32, #tpu.memory_space<vmem>>, vector<8x32xf32>
    %cst_4 = arith.constant 5.000000e-01 : f32
    %7 = vector.broadcast %cst_4 : f32 to vector<8x32xf32>
    %8 = arith.mulf %6, %7 : vector<8x32xf32>
    %c0_5 = arith.constant 0 : index
    %c0_6 = arith.constant 0 : index
    %9 = vector.load %arg5[%c0_5, %c0_6] : memref<8x1xf32, #tpu.memory_space<vmem>>, vector<8x1xf32>
    %c0_7 = arith.constant 0 : index
    %c0_8 = arith.constant 0 : index
    %10 = vector.load %arg6[%c0_7, %c0_8] : memref<8x1xf32, #tpu.memory_space<vmem>>, vector<8x1xf32>
    %cst_9 = arith.constant dense<0xFF800000> : vector<8xf32>
    %11 = vector.multi_reduction <maximumf>, %5, %cst_9 [1] : vector<8x32xf32> to vector<8xf32>
    %12 = vector.shape_cast %11 : vector<8xf32> to vector<8x1xf32>
    %13 = arith.maximumf %9, %12 : vector<8x1xf32>
    %cst_10 = arith.constant dense<0xFF800000> : vector<8xf32>
    %14 = vector.multi_reduction <maximumf>, %8, %cst_10 [1] : vector<8x32xf32> to vector<8xf32>
    %15 = vector.shape_cast %14 : vector<8xf32> to vector<8x1xf32>
    %16 = arith.maximumf %10, %15 : vector<8x1xf32>
    %17 = arith.subf %9, %13 : vector<8x1xf32>
    %18 = math.exp %17 : vector<8x1xf32>
    %19 = arith.subf %10, %16 : vector<8x1xf32>
    %20 = math.exp %19 : vector<8x1xf32>
    %21 = vector.broadcast %13 : vector<8x1xf32> to vector<8x32xf32>
    %22 = arith.subf %5, %21 : vector<8x32xf32>
    %23 = math.exp %22 : vector<8x32xf32>
    %24 = vector.broadcast %16 : vector<8x1xf32> to vector<8x32xf32>
    %25 = arith.subf %8, %24 : vector<8x32xf32>
    %26 = math.exp %25 : vector<8x32xf32>
    %c0_11 = arith.constant 0 : index
    %c0_12 = arith.constant 0 : index
    %27 = vector.load %arg7[%c0_11, %c0_12] : memref<8x1xf32, #tpu.memory_space<vmem>>, vector<8x1xf32>
    %28 = arith.mulf %27, %18 : vector<8x1xf32>
    %cst_13 = arith.constant dense<0.000000e+00> : vector<8xf32>
    %29 = vector.multi_reduction <add>, %23, %cst_13 [1] : vector<8x32xf32> to vector<8xf32>
    %30 = vector.shape_cast %29 : vector<8xf32> to vector<8x1xf32>
    %31 = arith.addf %28, %30 : vector<8x1xf32>
    %c0_14 = arith.constant 0 : index
    %c0_15 = arith.constant 0 : index
    %32 = vector.load %arg7[%c0_14, %c0_15] : memref<8x1xf32, #tpu.memory_space<vmem>>, vector<8x1xf32>
    tpu.vector_store %arg7[%c0_14, %c0_15], %31 {strides = array<i32>} : memref<8x1xf32, #tpu.memory_space<vmem>>, vector<8x1xf32>,
    %c0_16 = arith.constant 0 : index
    %c0_17 = arith.constant 0 : index
    %33 = vector.load %arg8[%c0_16, %c0_17] : memref<8x1xf32, #tpu.memory_space<vmem>>, vector<8x1xf32>
    %34 = arith.mulf %33, %20 : vector<8x1xf32>
    %cst_18 = arith.constant dense<0.000000e+00> : vector<8xf32>
    %35 = vector.multi_reduction <add>, %26, %cst_18 [1] : vector<8x32xf32> to vector<8xf32>
    %36 = vector.shape_cast %35 : vector<8xf32> to vector<8x1xf32>
    %37 = arith.addf %34, %36 : vector<8x1xf32>
    %c0_19 = arith.constant 0 : index
    %c0_20 = arith.constant 0 : index
    %38 = vector.load %arg8[%c0_19, %c0_20] : memref<8x1xf32, #tpu.memory_space<vmem>>, vector<8x1xf32>
    tpu.vector_store %arg8[%c0_19, %c0_20], %37 {strides = array<i32>} : memref<8x1xf32, #tpu.memory_space<vmem>>, vector<8x1xf32>,
    %c0_21 = arith.constant 0 : index
    %c0_22 = arith.constant 0 : index
    %39 = vector.load %arg9[%c0_21, %c0_22] : memref<8x1xf32, #tpu.memory_space<vmem>>, vector<8x1xf32>
    %40 = arith.mulf %39, %20 : vector<8x1xf32>
    %41 = arith.subf %8, %5 : vector<8x32xf32>
    %42 = arith.mulf %26, %41 : vector<8x32xf32>
    %cst_23 = arith.constant dense<0.000000e+00> : vector<8xf32>
    %43 = vector.multi_reduction <add>, %42, %cst_23 [1] : vector<8x32xf32> to vector<8xf32>
    %44 = vector.shape_cast %43 : vector<8xf32> to vector<8x1xf32>
    %45 = arith.addf %40, %44 : vector<8x1xf32>
    %c0_24 = arith.constant 0 : index
    %c0_25 = arith.constant 0 : index
    %46 = vector.load %arg9[%c0_24, %c0_25] : memref<8x1xf32, #tpu.memory_space<vmem>>, vector<8x1xf32>
    tpu.vector_store %arg9[%c0_24, %c0_25], %45 {strides = array<i32>} : memref<8x1xf32, #tpu.memory_space<vmem>>, vector<8x1xf32>,
    %c0_26 = arith.constant 0 : index
    %c0_27 = arith.constant 0 : index
    %47 = vector.load %arg5[%c0_26, %c0_27] : memref<8x1xf32, #tpu.memory_space<vmem>>, vector<8x1xf32>
    tpu.vector_store %arg5[%c0_26, %c0_27], %13 {strides = array<i32>} : memref<8x1xf32, #tpu.memory_space<vmem>>, vector<8x1xf32>,
    %c0_28 = arith.constant 0 : index
    %c0_29 = arith.constant 0 : index
    %48 = vector.load %arg6[%c0_28, %c0_29] : memref<8x1xf32, #tpu.memory_space<vmem>>, vector<8x1xf32>
    tpu.vector_store %arg6[%c0_28, %c0_29], %16 {strides = array<i32>} : memref<8x1xf32, #tpu.memory_space<vmem>>, vector<8x1xf32>,
    %c0_i32_30 = arith.constant 0 : i32
    %49 = arith.cmpi eq, %arg1, %c0_i32_30 : i32
    %50 = arith.extui %49 : i1 to i32
    %c0_i32_31 = arith.constant 0 : i32
    %51 = arith.cmpi ne, %50, %c0_i32_31 : i32
    scf.if %51 {
      %c0_32 = arith.constant 0 : index
      %c0_33 = arith.constant 0 : index
      %52 = vector.load %arg7[%c0_32, %c0_33] : memref<8x1xf32, #tpu.memory_space<vmem>>, vector<8x1xf32>
      %c0_34 = arith.constant 0 : index
      %c0_35 = arith.constant 0 : index
      %53 = vector.load %arg8[%c0_34, %c0_35] : memref<8x1xf32, #tpu.memory_space<vmem>>, vector<8x1xf32>
      %c0_36 = arith.constant 0 : index
      %c0_37 = arith.constant 0 : index
      %54 = vector.load %arg9[%c0_36, %c0_37] : memref<8x1xf32, #tpu.memory_space<vmem>>, vector<8x1xf32>
      %55 = arith.divf %54, %53 : vector<8x1xf32>
      %c0_38 = arith.constant 0 : index
      %c0_39 = arith.constant 0 : index
      %56 = vector.load %arg5[%c0_38, %c0_39] : memref<8x1xf32, #tpu.memory_space<vmem>>, vector<8x1xf32>
      %57 = math.log %52 : vector<8x1xf32>
      %58 = arith.addf %56, %57 : vector<8x1xf32>
      %59 = arith.addf %55, %58 : vector<8x1xf32>
      %c0_40 = arith.constant 0 : index
      %c0_41 = arith.constant 0 : index
      %60 = vector.load %arg6[%c0_40, %c0_41] : memref<8x1xf32, #tpu.memory_space<vmem>>, vector<8x1xf32>
      %61 = math.log %53 : vector<8x1xf32>
      %62 = arith.addf %60, %61 : vector<8x1xf32>
      %63 = arith.subf %59, %62 : vector<8x1xf32>
      %cst_42 = arith.constant dense<0.000000e+00> : vector<1xf32>
      %64 = vector.multi_reduction <add>, %63, %cst_42 [0] : vector<8x1xf32> to vector<1xf32>
      %65 = vector.shape_cast %64 : vector<1xf32> to vector<1x1xf32>
      %66 = vector.shape_cast %65 : vector<1x1xf32> to vector<1x1x1xf32>
      %67 = vector.broadcast %66 : vector<1x1x1xf32> to vector<1x8x128xf32>
      %c0_43 = arith.constant 0 : index
      %c0_44 = arith.constant 0 : index
      %c0_45 = arith.constant 0 : index
      %68 = vector.load %arg4[%c0_43, %c0_44, %c0_45] : memref<1x8x128xf32, #tpu.memory_space<vmem>>, vector<1x8x128xf32>
      tpu.vector_store %arg4[%c0_43, %c0_44, %c0_45], %67 {strides = array<i32>} : memref<1x8x128xf32, #tpu.memory_space<vmem>>, vector<1x8x128xf32>,
    } else {
    }
    return
  }
  func.func @transform_0(%arg0: i32, %arg1: i32) -> (i32, i32) {
    %c0_i32 = arith.constant 0 : i32
    return %arg0, %arg1 : i32, i32
  }
  func.func @transform_1(%arg0: i32, %arg1: i32) -> (i32, i32) {
    %c0_i32 = arith.constant 0 : i32
    return %arg0, %arg1 : i32, i32
  }
  func.func @transform_2(%arg0: i32, %arg1: i32) -> (i32, i32, i32) {
    %c0_i32 = arith.constant 0 : i32
    %c0_i32_0 = arith.constant 0 : i32
    %c0_i32_1 = arith.constant 0 : i32
    return %arg0, %c0_i32, %c0_i32_0 : i32, i32, i32
  }
}

</mosaic_0001>

<bundles_post_ra>
// kernel: tpu_custom_call.1
= control target key start
LH: loop header
LB: loop body
LE: loop exit
PB: predicated region body
PF: predicated region fallthrough
CT: control target
= control target key end

     0   :  { %7 = vsyncpa [#allocation8], 0  ;;  %s323_s0 = inlined_call_operand.hbm [shape: f32[8,32], index: 0, kind: input, shape index: {}]   ;;  %s324_s1 = inlined_call_operand.hbm [shape: f32[8,32], index: 1, kind: input, shape index: {}]   ;;  %s325_s2 = inlined_call_operand.hbm [shape: f32[1,8,128], index: 2, kind: output, shape index: {}]  }
   0x1   :  { %8 = vsyncpa [#allocation11], 0 }
   0x2   :  { %9 = vsyncpa [#allocation9], 0  ;;  %s250_s9 = smov [#allocation7]   ;;  %s251_s11 = smov [#allocation10]  }
   0x3   :  { %s16_s10 = sshll.u32 %s250_s9, 4  ;;  %s26_s12 = sshll.u32 %s251_s11, 4  ;;  %s17_s10 = int_to_ptr.vmem [resolvable:$true] %s16_s10  ;;  %s27_s12 = int_to_ptr.vmem [resolvable:$true] %s26_s12 }
   0x4   :  { %s178_s15 = scalar_lea.hbm %s323_s0, 128 }
   0x5   :  { %p179_p0 = scmp.ne.s32.totalorder %s323_s0, %s178_s15  ;;  %p182_p1 = scmp.lt.u32.totalorder %s178_s15, %s323_s0 }
   0x7   :  { %p184_p2 = pnand %p182_p1, %p179_p0 }
   0x9   :  { %187 = shalt.err (!%p184_p2)
}
   0xa   :  { %s188_s20 = scalar_lea.vmem %s17_s10, 128  ;;  %p193_p4 = scmp.lt.s32.totalorder %s17_s10, %s17_s10 }
   0xb   :  { %p189_p3 = scmp.ne.s32.totalorder %s17_s10, %s188_s20  ;;  %p194_p5 = scmp.lt.s32.totalorder %s188_s20, %s188_s20 }
   0xd   :  { %p195_p6 = por %p194_p5, %p193_p4 }
   0xf   :  { %p196_p7 = pnand %p195_p6, %p189_p3 }
  0x11   :  { %199 = shalt.err (!%p196_p7)
}
  0x12   :  { %19 = dma.hbm_to_vmem [thread:$0]  %s323_s0, 128, %s17_s10, [#allocation8]  }
  0x13   :  { %s200_s25 = scalar_lea.hbm %s324_s1, 128 }
  0x14   :  { %p201_p8 = scmp.ne.s32.totalorder %s324_s1, %s200_s25  ;;  %p204_p9 = scmp.lt.u32.totalorder %s200_s25, %s324_s1 }
  0x16   :  { %p206_p10 = pnand %p204_p9, %p201_p8 }
  0x18   :  { %209 = shalt.err (!%p206_p10)
}
  0x19   :  { %s210_s30 = scalar_lea.vmem %s27_s12, 128  ;;  %p215_p12 = scmp.lt.s32.totalorder %s27_s12, %s27_s12 }
  0x1a   :  { %p211_p11 = scmp.ne.s32.totalorder %s27_s12, %s210_s30  ;;  %p216_p13 = scmp.lt.s32.totalorder %s210_s30, %s210_s30 }
  0x1c   :  { %p217_p0 = por %p216_p13, %p215_p12 }
  0x1e   :  { %p218_p1 = pnand %p217_p0, %p211_p11 }
  0x20   :  { %221 = shalt.err (!%p218_p1)
}
  0x21   :  { %29 = dma.hbm_to_vmem [thread:$0]  %s324_s1, 128, %s27_s12, [#allocation11]  }
  0x22   :  { %244 = dma.done.wait [#allocation8], 128  }
  0x23   :  { %245 = vsyncadd [#allocation8], 4294967168 }
  0x24   :  { %246 = dma.done.wait [#allocation11], 128  }
  0x25   :  { %247 = vsyncadd [#allocation11], 4294967168  ;;  %vm40_vm0 = vcmask 7168   ;;  %v252_v0 = vmov -inf   ;;  %v46_v1 = vld [vmem:[#allocation7] sm:$0xff]  ;;  %vm52_vm1 = vcmask 261120  }
  0x26   :  { %41 = vst.msk [vmem:[#allocation2] sm:$0xff] %vm40_vm0, %v252_v0  ;;  %42 = vst.msk [vmem:[#allocation3] sm:$0xff] %vm40_vm0, %v252_v0  ;;  %v48_v2 = vld [vmem:[#allocation10] sm:$0xff]  ;;  %v47_v3 = vmul.f32 0.5, %v46_v1  ;;  %v253_v7 = vmov 0   ;;  %v254_v8 = vmov 0.0  }
  0x27   :  { %v49_v4 = vmul.f32 0.5, %v48_v2  ;;  %162 = vset.pattern.permute.xlu1 %v253_v7  ;;  %163 = vset.pattern.permute.xlu0 %v253_v7  ;;  %43 = vst.msk [vmem:[#allocation4] sm:$0xff] %vm40_vm0, %v254_v8  ;;  %44 = vst.msk [vmem:[#allocation5] sm:$0xff] %vm40_vm0, %v254_v8  ;;  %s255_s1 = smov [#allocation12]  }
  0x28   :  { %v53_v5 = vsel %vm52_vm1, %v47_v3, -inf  ;;  %45 = vst.msk [vmem:[#allocation6] sm:$0xff] %vm40_vm0, %v254_v8  ;;  %s146_s4 = sshll.u32 %s255_s1, 4  ;;  %s147_s4 = int_to_ptr.vmem [resolvable:$true] %s146_s4 }
  0x29   :  { %54 = vmax.xlane.f32.xlu0 %v53_v5  ;;  %v57_v6 = vsel %vm52_vm1, %v49_v4, -inf  ;;  %v100_v25 = vsub.f32 %v49_v4, %v47_v3  ;;  %s222_s5 = scalar_lea.vmem %s147_s4, 128  ;;  %p227_p3 = scmp.lt.s32.totalorder %s147_s4, %s147_s4 }
  0x2a   :  { %p223_p2 = scmp.ne.s32.totalorder %s147_s4, %s222_s5  ;;  %p228_p4 = scmp.lt.s32.totalorder %s222_s5, %s222_s5 }
  0x2c   :  { %p229_p5 = por %p228_p4, %p227_p3 }
  0x2d   :  { %58 = vmax.xlane.f32.xlu0 %v57_v6  ;;  %v50_v9 = vld [vmem:[#allocation2] sm:$0xff]  ;;  %v51_v12 = vld [vmem:[#allocation3] sm:$0xff] }
  0x2e   :  { %v83_v33 = vld [vmem:[#allocation4] sm:$0xff]  ;;  %v91_v37 = vld [vmem:[#allocation5] sm:$0xff]  ;;  %p230_p6 = pnand %p229_p5, %p223_p2 }
  0x2f   :  { %v98_v39 = vld [vmem:[#allocation6] sm:$0xff] }
  0xb6   :  { %v55_v10 = vpop.xlane.xlu0 %54 }
  0xb7   :  { %v56_v11 = vmax.f32 %v50_v9, %v55_v10 }
  0xb9   :  { %v61_v13 = vsub.f32 %v50_v9, %v56_v11  ;;  %107 = vst.msk [vmem:[#allocation2] sm:$0xff] %vm40_vm0, %v56_v11  ;;  %69 = vperm.xlu1 %162, %v56_v11  }
  0xba   :  { %v59_v14 = vpop.xlane.xlu0 %58 }
  0xbb   :  { %v60_v15 = vmax.f32 %v51_v12, %v59_v14  ;;  %v62_v30 = vmul.f32 1.442695, %v61_v13 }
  0xbd   :  { %v64_v16 = vsub.f32 %v51_v12, %v60_v15  ;;  %108 = vst.msk [vmem:[#allocation3] sm:$0xff] %vm40_vm0, %v60_v15  ;;  %77 = vperm.xlu1 %162, %v60_v15  }
  0xbf   :  { %v65_v31 = vmul.f32 1.442695, %v64_v16 }
  0xc0   :  { %v117_v52 = vld [vmem:[#allocation2] sm:$0xff] }
  0xc4   :  { %v122_v58 = vld [vmem:[#allocation3] sm:$0xff] }
 0x138   :  { %v70_v17 = vpop.permute.xlu1 %69 }
 0x139   :  { %v72_v18 = vsub.f32 %v47_v3, %v70_v17 }
 0x13b   :  { %v73_v19 = vmul.f32 1.442695, %v72_v18 }
 0x13c   :  { %v78_v20 = vpop.permute.xlu1 %77 }
 0x13d   :  { %164 = vpow2.f32 %v73_v19  ;;  %v80_v21 = vsub.f32 %v49_v4, %v78_v20 }
 0x13f   :  { %v81_v22 = vmul.f32 1.442695, %v80_v21 }
 0x141   :  { %166 = vpow2.f32 %v81_v22 }
 0x142   :  { %168 = vpow2.f32 %v62_v30 }
 0x143   :  { %170 = vpow2.f32 %v65_v31 }
 0x147   :  { %v165_v23 = vpop.eup %164 }
 0x148   :  { %v85_v24 = vsel %vm52_vm1, %v165_v23, 0.0 }
 0x149   :  { %86 = vadd.xlane.f32.xlu0 %v85_v24 }
 0x14b   :  { %v167_v26 = vpop.eup %166 }
 0x14c   :  { %v93_v27 = vsel %vm52_vm1, %v167_v26, 0.0  ;;  %v101_v28 = vmul.f32 %v167_v26, %v100_v25  ;;  %v169_v32 = vpop.eup %168 }
 0x14d   :  { %94 = vadd.xlane.f32.xlu1 %v93_v27  ;;  %v84_v34 = vmul.f32 %v169_v32, %v83_v33  ;;  %v171_v35 = vpop.eup %170 }
 0x14e   :  { %v102_v29 = vsel %vm52_vm1, %v101_v28, 0.0  ;;  %v92_v40 = vmul.f32 %v171_v35, %v91_v37  ;;  %v99_v43 = vmul.f32 %v171_v35, %v98_v39 }
 0x14f   :  { %103 = vadd.xlane.f32.xlu0 %v102_v29 }
 0x1d6   :  { %v87_v36 = vpop.xlane.xlu0 %86 }
 0x1d7   :  { %v88_v38 = vadd.f32 %v87_v36, %v84_v34 }
 0x1d9   :  { %90 = vst.msk [vmem:[#allocation4] sm:$0xff] %vm40_vm0, %v88_v38 }
 0x1da   :  { %v95_v41 = vpop.xlane.xlu1 %94 }
 0x1db   :  { %v96_v42 = vadd.f32 %v95_v41, %v92_v40 }
 0x1dc   :  { %v104_v44 = vpop.xlane.xlu0 %103 }
 0x1dd   :  { %97 = vst.msk [vmem:[#allocation5] sm:$0xff] %vm40_vm0, %v96_v42  ;;  %v105_v45 = vadd.f32 %v104_v44, %v99_v43 }
 0x1df   :  { %106 = vst.msk [vmem:[#allocation6] sm:$0xff] %vm40_vm0, %v105_v45 }
 0x1e0   :  { %v112_v46 = vld [vmem:[#allocation4] sm:$0xff] }
 0x1e1   :  { %172 = vlog2.f32 %v112_v46 }
 0x1e4   :  { %v113_v47 = vld [vmem:[#allocation5] sm:$0xff] }
 0x1e5   :  { %174 = vrcp.f32 %v113_v47 }
 0x1e6   :  { %176 = vlog2.f32 %v113_v47  ;;  %v114_v51 = vld [vmem:[#allocation6] sm:$0xff] }
 0x1eb   :  { %v173_v48 = vpop.eup %172 }
 0x1ec   :  { %v119_v49 = vmul.f32 0.6931472, %v173_v48 }
 0x1ee   :  { %v120_v55 = vadd.f32 %v119_v49, %v117_v52 }
 0x1ef   :  { %v175_v50 = vpop.eup %174 }
 0x1f0   :  { %v177_v53 = vpop.eup %176  ;;  %v116_v54 = vmul.f32 %v175_v50, %v114_v51 }
 0x1f1   :  { %v124_v56 = vmul.f32 0.6931472, %v177_v53 }
 0x1f2   :  { %v121_v57 = vadd.f32 %v120_v55, %v116_v54 }
 0x1f3   :  { %v125_v59 = vadd.f32 %v124_v56, %v122_v58 }
 0x1f5   :  { %v126_v60 = vsub.f32 %v121_v57, %v125_v59 }
 0x1f7   :  { %v127_v61 = vsel %vm40_vm0, %v126_v60, 0.0 }
 0x1f8   :  { %v128_v62 = vrot.slane %v127_v61, 4 }
 0x1fa   :  { %v129_v63 = vadd.f32 %v128_v62, %v127_v61 }
 0x1fc   :  { %v130_v0 = vrot.slane %v129_v63, 2 }
 0x1fe   :  { %v131_v1 = vadd.f32 %v130_v0, %v129_v63 }
 0x200   :  { %v132_v2 = vrot.slane %v131_v1, 1 }
 0x202   :  { %v133_v3 = vadd.f32 %v132_v2, %v131_v1 }
 0x204   :  { %136 = vperm.xlu0 %163, %v133_v3  }
 0x283   :  { %v137_v4 = vpop.permute.xlu0 %136 }
 0x284   :  { %139 = vst [vmem:[#allocation12] sm:$0xff] %v137_v4 }
 0x285   :  { %233 = shalt.err (!%p230_p6)
}
 0x286   :  { %s234_s8 = scalar_lea.hbm %s325_s2, 128 }
 0x287   :  { %p235_p7 = scmp.ne.s32.totalorder %s325_s2, %s234_s8  ;;  %p238_p8 = scmp.lt.u32.totalorder %s234_s8, %s325_s2 }
 0x289   :  { %p240_p9 = pnand %p238_p8, %p235_p7 }
 0x28b   :  { %243 = shalt.err (!%p240_p9)
}
 0x28c   :  { %149 = dma.vmem_to_hbm [thread:$0]  %s147_s4, 128, %s325_s2, [#allocation9]  }
 0x28d   :  { %248 = dma.done.wait [#allocation9], 128  }
 0x28e   :  { %249 = vsyncadd [#allocation9], 4294967168 }
 0x28f   :  { %153 = vsyncpa [#allocation8], 1 }
 0x290   :  { %154 = vsyncpa [#allocation11], 1 }
 0x291   :  { %155 = vsyncpa [#allocation9], 1 }

</bundles_post_ra>
